<compile_context>
chip_gen: v5e
topology: v5e:2x2
jax: 0.10.0
libtpu: 0.0.40
codegen_flags: <defaults>
</compile_context>

<pallas_src>
import jax
import jax.numpy as jnp
from jax.experimental import pallas as pl
from jax.experimental.pallas import tpu as pltpu


_LANE = 128


# ----------------------------------------------------------------------------
# Tile selection: lane tile is a multiple of 128 (<= 2048); the channel tile is
# either the full channel group (always a legal block) or a multiple-of-8
# divisor of it, shrunk until the x block (T * tc * thw * itemsize) fits a
# ~4 MiB budget (sized for v7x's 64 MiB physical VMEM; fits default scoped
# limits on v5e/v6e as well).
# ----------------------------------------------------------------------------
def _choose_tiles(T, cg, HW, x_itemsize, budget_bytes=4 << 20):
    thw = _LANE
    while thw < 2048 and thw < HW:
        thw *= 2
    tcg = cg
    while T * tcg * thw * x_itemsize > budget_bytes:
        nxt = tcg // 2
        if nxt >= 8 and nxt % 8 == 0 and cg % nxt == 0:
            tcg = nxt
        elif thw > _LANE:
            thw //= 2
        else:
            break
    return tcg, thw


def _pad_lanes(a, HW, HWp):
    if HWp == HW:
        return a
    pad = [(0, 0)] * (a.ndim - 1) + [(0, HWp - HW)]
    return jnp.pad(a, pad)


# ----------------------------------------------------------------------------
# Kernel 1: per-head weighted temporal sum.
#   out[b, hd, c, s] = sum_t w[hd, b, t, s] * x[b, t, hd, c, s]
# ----------------------------------------------------------------------------
def _wsum_kernel(x_ref, w_ref, o_ref):
    # x_ref: (1, T, 1, tcg, thw)  activations (any float dtype, upcast per step)
    # w_ref: (1, 1, T, thw)       f32 per-timestep weight maps
    # o_ref: (1, 1, tcg, thw)     output tile
    T = x_ref.shape[1]
    tcg, thw = x_ref.shape[3], x_ref.shape[4]
    acc = jnp.zeros((tcg, thw), jnp.float32)
    # T is static -> fully unrolled accumulate; live data per step is one x
    # slice plus the f32 accumulator.
    for t in range(T):
        xt = x_ref[0, t, 0].astype(jnp.float32)                 # (tcg, thw)
        wt = w_ref[0, 0, pl.ds(t, 1), :].astype(jnp.float32)    # (1, thw)
        acc = acc + xt * wt
    o_ref[0, 0] = acc.astype(o_ref.dtype)


def _weighted_sum_heads(x, w, out_dtype=None):
    """x: [B,T,C,H,W]; w: [NH,B,T,H,W] float weights; C % NH == 0.

    Returns [B, C, H, W] with out[b, hd*cg + c] = sum_t w[hd,b,t] * x[b,t,hd*cg+c]
    (cg = C // NH).  Head/channel selection is done in the index_map, so x is
    never transposed or copied in HBM, and the output is written directly into
    its final (head-major channel) layout."""
    B, T, C, H, W = x.shape
    NH = w.shape[0]
    assert C % NH == 0, (C, NH)
    cg = C // NH
    HW = H * W
    out_dtype = out_dtype or x.dtype

    tcg, thw = _choose_tiles(T, cg, HW, x.dtype.itemsize)
    HWp = -(-HW // thw) * thw                                    # lane-dense pad

    x5 = _pad_lanes(x.reshape(B, T, NH, cg, HW), HW, HWp)        # free axis split
    wf = _pad_lanes(w.astype(jnp.float32).reshape(NH, B, T, HW), HW, HWp)

    xb = T * tcg * thw * x.dtype.itemsize
    wb = T * thw * 4
    ob = tcg * thw * jnp.dtype(out_dtype).itemsize
    vmem_limit = int(min(64 << 20, max(32 << 20, 2 * (xb + wb + ob) + (8 << 20))))

    out = pl.pallas_call(
        _wsum_kernel,
        out_shape=jax.ShapeDtypeStruct((B, NH, cg, HWp), out_dtype),
        grid=(NH, B, cg // tcg, HWp // thw),
        in_specs=[
            pl.BlockSpec((1, T, 1, tcg, thw), lambda h, b, ci, si: (b, 0, h, ci, si)),
            pl.BlockSpec((1, 1, T, thw), lambda h, b, ci, si: (h, b, 0, si)),
        ],
        out_specs=pl.BlockSpec((1, 1, tcg, thw), lambda h, b, ci, si: (b, h, ci, si)),
        compiler_params=pltpu.CompilerParams(
            dimension_semantics=("parallel", "parallel", "parallel", "parallel"),
            vmem_limit_bytes=vmem_limit,
        ),
    )(x5, wf)

    return out.reshape(B, C, HWp)[:, :, :HW].reshape(B, C, H, W)


# ----------------------------------------------------------------------------
# Kernel 2: masked temporal sum with per-(b, t) scalar weights in SMEM.
#   out[b, c, s] = sum_t valid[b, t] * x[b, t, c, s]
# ----------------------------------------------------------------------------
def _masked_sum_kernel(valid_ref, x_ref, o_ref):
    # valid_ref: SMEM (B, T) int32 in {0,1} (scalar prefetch)
    # x_ref: (1, T, tc, thw); o_ref: (1, tc, thw) f32
    b = pl.program_id(0)
    T = x_ref.shape[1]
    tc, thw = x_ref.shape[2], x_ref.shape[3]
    acc = jnp.zeros((tc, thw), jnp.float32)
    for t in range(T):
        acc = acc + x_ref[0, t].astype(jnp.float32) * valid_ref[b, t].astype(jnp.float32)
    o_ref[0] = acc


def _masked_temporal_sum(x, valid):
    """x: [B,T,C,H,W]; valid: [B,T] int32 {0,1} -> f32 [B,C,H,W] = sum_t valid*x.

    The per-(b,t) scalars travel through SMEM; no [B,T,H,W] broadcast weight
    map is materialized in HBM."""
    B, T, C, H, W = x.shape
    HW = H * W
    tc, thw = _choose_tiles(T, C, HW, x.dtype.itemsize)
    HWp = -(-HW // thw) * thw
    x4 = _pad_lanes(x.reshape(B, T, C, HW), HW, HWp)

    xb = T * tc * thw * x.dtype.itemsize
    ob = tc * thw * 4
    vmem_limit = int(min(64 << 20, max(32 << 20, 2 * (xb + ob) + (8 << 20))))

    out = pl.pallas_call(
        _masked_sum_kernel,
        out_shape=jax.ShapeDtypeStruct((B, C, HWp), jnp.float32),
        grid_spec=pltpu.PrefetchScalarGridSpec(
            num_scalar_prefetch=1,
            grid=(B, C // tc, HWp // thw),
            in_specs=[pl.BlockSpec((1, T, tc, thw),
                                   lambda b, ci, si, valid_ref: (b, 0, ci, si))],
            out_specs=pl.BlockSpec((1, tc, thw),
                                   lambda b, ci, si, valid_ref: (b, ci, si)),
        ),
        compiler_params=pltpu.CompilerParams(
            dimension_semantics=("parallel", "parallel", "parallel"),
            vmem_limit_bytes=vmem_limit,
        ),
    )(valid.astype(jnp.int32), x4)
    return out[:, :, :HW].reshape(B, C, H, W)


# ----------------------------------------------------------------------------
# Glue: attention-map resizing (matches nn.Upsample(bilinear, align_corners
# =False) and nn.AvgPool2d(kernel_size=w // H)).
# ----------------------------------------------------------------------------
def _upsample_bilinear(attn, target_hw):
    out_shape = attn.shape[:-2] + tuple(target_hw)
    return jax.image.resize(attn.astype(jnp.float32), out_shape, method="bilinear")


def _resize_attn_group(attn, target_hw):
    h, w = attn.shape[-2:]
    Hx, Wx = target_hw
    if Hx > w:                         # upsample (half-pixel centers)
        return _upsample_bilinear(attn, target_hw)
    k = w // Hx                        # AvgPool2d(kernel_size=k)
    lead = attn.shape[:-2]
    hp, wp = h // k, w // k
    a = attn[..., :hp * k, :wp * k].astype(jnp.float32)
    return a.reshape(*lead, hp, k, wp, k).mean(axis=(-3, -1))


# ----------------------------------------------------------------------------
# Temporal_Aggregator.forward
# ----------------------------------------------------------------------------
def temporal_aggregator(x, pad_mask=None, attn_mask=None, mode="mean"):
    """JAX/Pallas port of Temporal_Aggregator.forward.

    The pad/no-pad choice is folded into the weights (no traced `.any()`), so
    the function is jittable with `mode` static."""
    B, T, C, H, W = x.shape

    if mode == "mean":
        if pad_mask is not None:
            valid = (~pad_mask).astype(jnp.int32)                    # [B, T]
        else:
            valid = jnp.ones((B, T), jnp.int32)
        count = valid.sum(axis=1).astype(jnp.float32)                # [B]
        summed = _masked_temporal_sum(x, valid)                      # f32 [B,C,H,W]
        return (summed / count[:, None, None, None]).astype(x.dtype)

    if mode == "att_mean":
        attn = attn_mask.astype(jnp.float32).mean(axis=0)            # [B, T, h, w]
        attn = _upsample_bilinear(attn, (H, W))                      # [B, T, H, W]
        if pad_mask is not None:
            attn = attn * (~pad_mask).astype(jnp.float32)[:, :, None, None]
        return _weighted_sum_heads(x, attn[None])                    # NH = 1

    if mode == "att_group":
        if attn_mask.ndim == 6:
            # (n_heads, B, Tq, T, h, w): per-query-time weighted sums.
            NH, _, Tq, Tk, _, _ = attn_mask.shape
            assert Tk == T
            attn = _upsample_bilinear(attn_mask, (H, W))             # [NH,B,Tq,T,H,W]
            # TODO(synk): fuse the Tq loop into the kernel grid so x is read
            # from HBM once instead of once per query timestep.
            outs = [_weighted_sum_heads(x, attn[:, :, tq]) for tq in range(Tq)]
            return jnp.stack(outs, axis=1)                           # [B,Tq,C,H,W]
        # 5-D attn (n_heads, B, T, h, w)
        NH = attn_mask.shape[0]
        ha, wa = attn_mask.shape[-2:]
        attn = _resize_attn_group(attn_mask.reshape(NH * B, T, ha, wa), (H, W))
        attn = attn.reshape(NH, B, T, H, W)
        if pad_mask is not None:
            attn = attn * (~pad_mask).astype(jnp.float32)[None, :, :, None, None]
        return _weighted_sum_heads(x, attn)

    raise ValueError(f"Unknown mode: {mode}")


# ----------------------------------------------------------------------------
# Pure-JAX references (for correctness checking)
# ----------------------------------------------------------------------------
def _ref_mean(x, pad_mask):
    if pad_mask is None:
        return x.astype(jnp.float32).mean(axis=1)
    valid = (~pad_mask).astype(jnp.float32)
    out = (x.astype(jnp.float32) * valid[:, :, None, None, None]).sum(axis=1)
    return out / valid.sum(axis=1)[:, None, None, None]


def _ref_att_mean(x, pad_mask, attn_mask):
    H, W = x.shape[-2:]
    attn = _upsample_bilinear(attn_mask.astype(jnp.float32).mean(axis=0), (H, W))
    if pad_mask is not None:
        attn = attn * (~pad_mask).astype(jnp.float32)[:, :, None, None]
    return (x.astype(jnp.float32) * attn[:, :, None, :, :]).sum(axis=1)


def _ref_att_group5(x, pad_mask, attn_mask):
    B, T, C, H, W = x.shape
    NH = attn_mask.shape[0]
    attn = _resize_attn_group(
        attn_mask.reshape(NH * B, T, *attn_mask.shape[-2:]), (H, W)
    ).reshape(NH, B, T, H, W)
    if pad_mask is not None:
        attn = attn * (~pad_mask).astype(jnp.float32)[None, :, :, None, None]
    cg = C // NH
    outs = []
    for hd in range(NH):
        x_h = x[:, :, hd * cg:(hd + 1) * cg].astype(jnp.float32)
        outs.append((attn[hd][:, :, None] * x_h).sum(axis=1))
    return jnp.concatenate(outs, axis=1)


def _ref_att_group6(x, attn_mask):
    NH, B, Tq, T, _, _ = attn_mask.shape
    _, _, C, H, W = x.shape
    cg = C // NH
    attn = _upsample_bilinear(attn_mask, (H, W))                     # [NH,B,Tq,T,H,W]
    outs = []
    for hd in range(NH):
        x_h = x[:, :, hd * cg:(hd + 1) * cg].astype(jnp.float32)     # [B,T,cg,H,W]
        o = (attn[hd][:, :, :, None] * x_h[:, None]).sum(axis=2)     # [B,Tq,cg,H,W]
        outs.append(o)
    return jnp.concatenate(outs, axis=2)


# ----------------------------------------------------------------------------
if __name__ == "__main__":
    key = jax.random.PRNGKey(0)
    B, T, C, H, W = 2, 8, 8, 16, 16
    n_heads = 4
    ha, wa = 8, 8                      # attention map spatial size

    k1, k2, k3 = jax.random.split(key, 3)
    x = jax.random.normal(k1, (B, T, C, H, W), dtype=jnp.float32)
    attn5 = jax.nn.softmax(
        jax.random.normal(k2, (n_heads, B, T, ha, wa), dtype=jnp.float32), axis=2)
    attn6 = jax.nn.softmax(
        jax.random.normal(k3, (n_heads, B, T, T, ha, wa), dtype=jnp.float32), axis=3)
    pad_mask = jnp.zeros((B, T), dtype=bool).at[1, -2:].set(True)

    agg = jax.jit(temporal_aggregator, static_argnames=("mode",))

    # mode='mean' with and without pad mask
    out = jax.block_until_ready(agg(x, pad_mask=pad_mask, mode="mean"))
    assert out.shape == (B, C, H, W)
    assert jnp.allclose(out, _ref_mean(x, pad_mask), atol=1e-5), "mean/pad mismatch"
    out = jax.block_until_ready(agg(x, mode="mean"))
    assert jnp.allclose(out, _ref_mean(x, None), atol=1e-5), "mean mismatch"

    # mode='att_mean' with and without pad mask
    out = jax.block_until_ready(agg(x, pad_mask=pad_mask, attn_mask=attn5, mode="att_mean"))
    assert jnp.allclose(out, _ref_att_mean(x, pad_mask, attn5), atol=1e-5), "att_mean/pad"
    out = jax.block_until_ready(agg(x, attn_mask=attn5, mode="att_mean"))
    assert jnp.allclose(out, _ref_att_mean(x, None, attn5), atol=1e-5), "att_mean"

    # mode='att_group' with pad mask (5-D attn)
    out = jax.block_until_ready(agg(x, pad_mask=pad_mask, attn_mask=attn5, mode="att_group"))
    assert out.shape == (B, C, H, W)
    assert jnp.allclose(out, _ref_att_group5(x, pad_mask, attn5), atol=1e-5), "att_group/pad"

    # mode='att_group' without pad mask (6-D attn, per-query-time output)
    out = jax.block_until_ready(agg(x, attn_mask=attn6, mode="att_group"))
    assert out.shape == (B, T, C, H, W)
    assert jnp.allclose(out, _ref_att_group6(x, attn6), atol=1e-4), "att_group/6d"

    # bf16 activations stay bf16 in HBM; accumulation happens in f32 in-kernel
    xb = x.astype(jnp.bfloat16)
    out_bf = jax.block_until_ready(agg(xb, pad_mask=pad_mask, attn_mask=attn5, mode="att_group"))
    assert out_bf.dtype == jnp.bfloat16
    ref_bf = _ref_att_group5(xb.astype(jnp.float32), pad_mask, attn5)
    assert jnp.allclose(out_bf.astype(jnp.float32), ref_bf, atol=3e-2, rtol=3e-2), "bf16"

    print("KERNEL_OK")
</pallas_src>

<mosaic_0001>
module attributes {stable_mosaic.version = 11 : i64} {
  func.func @_masked_sum_kernel(%arg0: i32, %arg1: i32, %arg2: i32, %arg3: memref<2x8xi32, #tpu.memory_space<smem>>, %arg4: memref<1x8x8x256xf32, #tpu.memory_space<vmem>>, %arg5: memref<1x8x256xf32, #tpu.memory_space<vmem>>) attributes {dimension_semantics = [#tpu.dimension_semantics<parallel>, #tpu.dimension_semantics<parallel>, #tpu.dimension_semantics<parallel>], iteration_bounds = array<i64: 2, 1, 1>, scalar_prefetch = 1 : i64, scratch_operands = 0 : i64, tpu.core_type = #tpu.core_type<tc>, window_params = [{transform_indices = @transform_0, window_bounds = array<i64: 1, 8, 8, 256>}, {transform_indices = @transform_1, window_bounds = array<i64: 1, 8, 256>}]} {
    %cst = arith.constant 0.000000e+00 : f32
    %0 = vector.broadcast %cst : f32 to vector<8x256xf32>
    %c0 = arith.constant 0 : index
    %c0_0 = arith.constant 0 : index
    %c0_1 = arith.constant 0 : index
    %c0_2 = arith.constant 0 : index
    %1 = vector.load %arg4[%c0, %c0_0, %c0_1, %c0_2] : memref<1x8x8x256xf32, #tpu.memory_space<vmem>>, vector<1x1x8x256xf32>
    %2 = vector.shape_cast %1 : vector<1x1x8x256xf32> to vector<8x256xf32>
    %3 = arith.index_cast %arg0 : i32 to index
    %c0_3 = arith.constant 0 : index
    %4 = memref.load %arg3[%3, %c0_3] : memref<2x8xi32, #tpu.memory_space<smem>>
    %5 = arith.sitofp %4 : i32 to f32
    %6 = vector.broadcast %5 : f32 to vector<8x256xf32>
    %7 = arith.mulf %2, %6 : vector<8x256xf32>
    %8 = arith.addf %0, %7 : vector<8x256xf32>
    %c0_4 = arith.constant 0 : index
    %c1 = arith.constant 1 : index
    %c0_5 = arith.constant 0 : index
    %c0_6 = arith.constant 0 : index
    %9 = vector.load %arg4[%c0_4, %c1, %c0_5, %c0_6] : memref<1x8x8x256xf32, #tpu.memory_space<vmem>>, vector<1x1x8x256xf32>
    %10 = vector.shape_cast %9 : vector<1x1x8x256xf32> to vector<8x256xf32>
    %11 = arith.index_cast %arg0 : i32 to index
    %c1_7 = arith.constant 1 : index
    %12 = memref.load %arg3[%11, %c1_7] : memref<2x8xi32, #tpu.memory_space<smem>>
    %13 = arith.sitofp %12 : i32 to f32
    %14 = vector.broadcast %13 : f32 to vector<8x256xf32>
    %15 = arith.mulf %10, %14 : vector<8x256xf32>
    %16 = arith.addf %8, %15 : vector<8x256xf32>
    %c0_8 = arith.constant 0 : index
    %c2 = arith.constant 2 : index
    %c0_9 = arith.constant 0 : index
    %c0_10 = arith.constant 0 : index
    %17 = vector.load %arg4[%c0_8, %c2, %c0_9, %c0_10] : memref<1x8x8x256xf32, #tpu.memory_space<vmem>>, vector<1x1x8x256xf32>
    %18 = vector.shape_cast %17 : vector<1x1x8x256xf32> to vector<8x256xf32>
    %19 = arith.index_cast %arg0 : i32 to index
    %c2_11 = arith.constant 2 : index
    %20 = memref.load %arg3[%19, %c2_11] : memref<2x8xi32, #tpu.memory_space<smem>>
    %21 = arith.sitofp %20 : i32 to f32
    %22 = vector.broadcast %21 : f32 to vector<8x256xf32>
    %23 = arith.mulf %18, %22 : vector<8x256xf32>
    %24 = arith.addf %16, %23 : vector<8x256xf32>
    %c0_12 = arith.constant 0 : index
    %c3 = arith.constant 3 : index
    %c0_13 = arith.constant 0 : index
    %c0_14 = arith.constant 0 : index
    %25 = vector.load %arg4[%c0_12, %c3, %c0_13, %c0_14] : memref<1x8x8x256xf32, #tpu.memory_space<vmem>>, vector<1x1x8x256xf32>
    %26 = vector.shape_cast %25 : vector<1x1x8x256xf32> to vector<8x256xf32>
    %27 = arith.index_cast %arg0 : i32 to index
    %c3_15 = arith.constant 3 : index
    %28 = memref.load %arg3[%27, %c3_15] : memref<2x8xi32, #tpu.memory_space<smem>>
    %29 = arith.sitofp %28 : i32 to f32
    %30 = vector.broadcast %29 : f32 to vector<8x256xf32>
    %31 = arith.mulf %26, %30 : vector<8x256xf32>
    %32 = arith.addf %24, %31 : vector<8x256xf32>
    %c0_16 = arith.constant 0 : index
    %c4 = arith.constant 4 : index
    %c0_17 = arith.constant 0 : index
    %c0_18 = arith.constant 0 : index
    %33 = vector.load %arg4[%c0_16, %c4, %c0_17, %c0_18] : memref<1x8x8x256xf32, #tpu.memory_space<vmem>>, vector<1x1x8x256xf32>
    %34 = vector.shape_cast %33 : vector<1x1x8x256xf32> to vector<8x256xf32>
    %35 = arith.index_cast %arg0 : i32 to index
    %c4_19 = arith.constant 4 : index
    %36 = memref.load %arg3[%35, %c4_19] : memref<2x8xi32, #tpu.memory_space<smem>>
    %37 = arith.sitofp %36 : i32 to f32
    %38 = vector.broadcast %37 : f32 to vector<8x256xf32>
    %39 = arith.mulf %34, %38 : vector<8x256xf32>
    %40 = arith.addf %32, %39 : vector<8x256xf32>
    %c0_20 = arith.constant 0 : index
    %c5 = arith.constant 5 : index
    %c0_21 = arith.constant 0 : index
    %c0_22 = arith.constant 0 : index
    %41 = vector.load %arg4[%c0_20, %c5, %c0_21, %c0_22] : memref<1x8x8x256xf32, #tpu.memory_space<vmem>>, vector<1x1x8x256xf32>
    %42 = vector.shape_cast %41 : vector<1x1x8x256xf32> to vector<8x256xf32>
    %43 = arith.index_cast %arg0 : i32 to index
    %c5_23 = arith.constant 5 : index
    %44 = memref.load %arg3[%43, %c5_23] : memref<2x8xi32, #tpu.memory_space<smem>>
    %45 = arith.sitofp %44 : i32 to f32
    %46 = vector.broadcast %45 : f32 to vector<8x256xf32>
    %47 = arith.mulf %42, %46 : vector<8x256xf32>
    %48 = arith.addf %40, %47 : vector<8x256xf32>
    %c0_24 = arith.constant 0 : index
    %c6 = arith.constant 6 : index
    %c0_25 = arith.constant 0 : index
    %c0_26 = arith.constant 0 : index
    %49 = vector.load %arg4[%c0_24, %c6, %c0_25, %c0_26] : memref<1x8x8x256xf32, #tpu.memory_space<vmem>>, vector<1x1x8x256xf32>
    %50 = vector.shape_cast %49 : vector<1x1x8x256xf32> to vector<8x256xf32>
    %51 = arith.index_cast %arg0 : i32 to index
    %c6_27 = arith.constant 6 : index
    %52 = memref.load %arg3[%51, %c6_27] : memref<2x8xi32, #tpu.memory_space<smem>>
    %53 = arith.sitofp %52 : i32 to f32
    %54 = vector.broadcast %53 : f32 to vector<8x256xf32>
    %55 = arith.mulf %50, %54 : vector<8x256xf32>
    %56 = arith.addf %48, %55 : vector<8x256xf32>
    %c0_28 = arith.constant 0 : index
    %c7 = arith.constant 7 : index
    %c0_29 = arith.constant 0 : index
    %c0_30 = arith.constant 0 : index
    %57 = vector.load %arg4[%c0_28, %c7, %c0_29, %c0_30] : memref<1x8x8x256xf32, #tpu.memory_space<vmem>>, vector<1x1x8x256xf32>
    %58 = vector.shape_cast %57 : vector<1x1x8x256xf32> to vector<8x256xf32>
    %59 = arith.index_cast %arg0 : i32 to index
    %c7_31 = arith.constant 7 : index
    %60 = memref.load %arg3[%59, %c7_31] : memref<2x8xi32, #tpu.memory_space<smem>>
    %61 = arith.sitofp %60 : i32 to f32
    %62 = vector.broadcast %61 : f32 to vector<8x256xf32>
    %63 = arith.mulf %58, %62 : vector<8x256xf32>
    %64 = arith.addf %56, %63 : vector<8x256xf32>
    %c0_32 = arith.constant 0 : index
    %c0_33 = arith.constant 0 : index
    %c0_34 = arith.constant 0 : index
    %65 = vector.load %arg5[%c0_32, %c0_33, %c0_34] : memref<1x8x256xf32, #tpu.memory_space<vmem>>, vector<1x8x256xf32>
    %66 = vector.shape_cast %65 : vector<1x8x256xf32> to vector<8x256xf32>
    %67 = vector.shape_cast %64 : vector<8x256xf32> to vector<1x8x256xf32>
    tpu.vector_store %arg5[%c0_32, %c0_33, %c0_34], %67 {strides = array<i32>} : memref<1x8x256xf32, #tpu.memory_space<vmem>>, vector<1x8x256xf32>,
    return
  }
  func.func @transform_0(%arg0: i32, %arg1: i32, %arg2: i32, %arg3: memref<2x8xi32, #tpu.memory_space<smem>>) -> (i32, i32, i32, i32) {
    %c0_i32 = arith.constant 0 : i32
    %c0_i32_0 = arith.constant 0 : i32
    return %arg0, %c0_i32, %arg1, %arg2 : i32, i32, i32, i32
  }
  func.func @transform_1(%arg0: i32, %arg1: i32, %arg2: i32, %arg3: memref<2x8xi32, #tpu.memory_space<smem>>) -> (i32, i32, i32) {
    %c0_i32 = arith.constant 0 : i32
    return %arg0, %arg1, %arg2 : i32, i32, i32
  }
}

</mosaic_0001>

<bundles_post_ra>
// kernel: temporal_aggregator.1
= control target key start
LH: loop header
LB: loop body
LE: loop exit
PB: predicated region body
PF: predicated region fallthrough
CT: control target
= control target key end

     0   :  { %s488_s12 = smov [#allocation3]   ;;  %s590_s0 = inlined_call_operand.vmem [shape: s32[2,8], index: 0, kind: input, shape index: {}]   ;;  %s591_s1 = inlined_call_operand.vmem [shape: f32[2,8,8,256], index: 1, kind: input, shape index: {}]   ;;  %s592_s2 = inlined_call_operand.vmem [shape: f32[2,8,256], index: 2, kind: output, shape index: {}]  }
   0x1   :  { %s8_s11 = sshll.u32 %s590_s0, 4  ;;  %s9_s11 = int_to_ptr.vmem [resolvable:$true] %s8_s11 }
   0x2   :  { %11 = dma.vmem_to_smem %s9_s11, 32, %s488_s12, [#allocation2] }
   0x3   :  { %474 = dma.done.wait [#allocation2], 32 }
   0x4   :  { %475 = vsyncadd [#allocation2], 4294967264 }
   0x5   :  { %14 = sfence }
   0x6   :  { %s507_s13 = smov 0   ;;  %s509_s14 = smov 0  }
   0x7   :  { %s511_s15 = smov 0  }
   0x8 LB: > { %s39_s0 = sadd.s32 1, %s482_s14  ;;  %p401_p0 = scmp.ge.s32.totalorder %s486_s15, 1  ;;  %s486_s15 = sphi %s511_s15, %s20_s15   ;;  %s482_s14 = sphi %s509_s14, %s594_s14   ;;  %s478_s13 = sphi %s507_s13, %s593_s13  }
   0x9   : > { %p41_p1 = scmp.ge.s32.totalorder %s39_s0, 2  ;;  %p132_p2 = scmp.lt.s32.totalorder %s486_s15, 3 }
   0xb   : > { %s596_s0 = smov (%p41_p1, %s39_s0), 0  ;;  %p133_p3 = pnand %p401_p0, %p132_p2 }
   0xc   : > { %p169_p4 = scmp.lt.s32.totalorder (!%p133_p3), %s478_s13, 1  ;;  %s525_s16 = sshll.u32 (!%p133_p3), %s478_s13, 7 }
   0xd   : > { %136 = sbr.rel (%p133_p3) target bundleno = 42 (0x2a), region = 24  ;;  %s199_s17 = sld [smem:[#allocation3 + %s525_s16]] (!%p133_p3) }
   0xe   : > { %s209_s18 = sadd.s32 (!%p133_p3), 1, %s525_s16  ;;  %s220_s20 = sadd.s32 (!%p133_p3), 2, %s525_s16 }
   0xf   : > { %s210_s19 = sld [smem:[#allocation3 + %s209_s18]] (!%p133_p3)  ;;  %s231_s26 = sadd.s32 (!%p133_p3), 3, %s525_s16 }
  0x10   : > { %s538_s25 = sld [smem:[#allocation3 + %s220_s20]] (!%p133_p3)  ;;  %s242_s29 = sadd.s32 (!%p133_p3), 4, %s525_s16 }
  0x11   : > { %s542_s28 = sld [smem:[#allocation3 + %s231_s26]] (!%p133_p3)  ;;  %s253_s30 = sadd.s32 (!%p133_p3), 5, %s525_s16 }
  0x12   : > { %s598_s13 = smov (!%p169_p4, %s478_s13), 1  ;;  %s548_s4 = sld [smem:[#allocation3 + %s242_s29]] }
  0x13   : > { %s423_s21 = sshll.u32 %s598_s13, 7  ;;  %s200_s27 = scvt.s32.f32 %s199_s17 }
  0x14   : > { %s536_s24 = scalar_lea.vmem %s591_s1, %s423_s21  ;;  %s551_s5 = sld [smem:[#allocation3 + %s253_s30]] }
  0x15   : > { %v196_v0 = vld [vmem:[%s536_s24] sm:$0xff]  ;;  %v197_v1 = vld [vmem:[%s536_s24 + $0x8] sm:$0xff]  ;;  %v201_v2 = vstv %s200_s27  ;;  %v407_v3 = vld [vmem:[%s536_s24 + $0x10] sm:$0xff]  ;;  %s211_s3 = scvt.s32.f32 %s210_s19  ;;  %s264_s6 = sadd.s32 6, %s525_s16 }
  0x16   : > { %v408_v4 = vld [vmem:[%s536_s24 + $0x18] sm:$0xff]  ;;  %v202_v5 = vmul.f32 %v201_v2, %v196_v0  ;;  %v203_v6 = vmul.f32 %v201_v2, %v197_v1  ;;  %s554_s7 = sld [smem:[#allocation3 + %s264_s6]]  ;;  %s275_s8 = sadd.s32 7, %s525_s16  ;;  %v409_v9 = vld [vmem:[%s536_s24 + $0x20] sm:$0xff]  ;;  %v410_v11 = vld [vmem:[%s536_s24 + $0x28] sm:$0xff] }
  0x17   : > { %v212_v7 = vstv %s211_s3  ;;  %s222_s9 = scvt.s32.f32 %s538_s25  ;;  %s559_s10 = sld [smem:[#allocation3 + %s275_s8]]  ;;  %v411_v12 = vld [vmem:[%s536_s24 + $0x30] sm:$0xff]  ;;  %v412_v13 = vld [vmem:[%s536_s24 + $0x38] sm:$0xff]  ;;  %v413_v19 = vld [vmem:[%s536_s24 + $0x40] sm:$0xff] }
  0x18   : > { %v213_v8 = vmul.f32 %v407_v3, %v212_v7  ;;  %v214_v10 = vmul.f32 %v408_v4, %v212_v7  ;;  %s233_s11 = scvt.s32.f32 %s542_s28  ;;  %s244_s12 = scvt.s32.f32 %s548_s4  ;;  %v414_v21 = vld [vmem:[%s536_s24 + $0x48] sm:$0xff]  ;;  %v415_v23 = vld [vmem:[%s536_s24 + $0x50] sm:$0xff]  ;;  %v416_v28 = vld [vmem:[%s536_s24 + $0x58] sm:$0xff] }
  0x19   : > { %v223_v15 = vstv %s222_s9  ;;  %v417_v31 = vld [vmem:[%s536_s24 + $0x60] sm:$0xff]  ;;  %v418_v33 = vld [vmem:[%s536_s24 + $0x68] sm:$0xff]  ;;  %v419_v38 = vld [vmem:[%s536_s24 + $0x70] sm:$0xff]  ;;  %s424_s19 = sshll.u32 %s598_s13, 4 }
  0x1a   : > { %v215_v14 = vadd.f32 %v213_v8, %v202_v5  ;;  %v216_v16 = vadd.f32 %v214_v10, %v203_v6  ;;  %v224_v17 = vmul.f32 %v409_v9, %v223_v15  ;;  %v234_v18 = vstv %s233_s11  ;;  %s255_s16 = scvt.s32.f32 %s551_s5  ;;  %v420_v41 = vld [vmem:[%s536_s24 + $0x78] sm:$0xff]  ;;  %s194_s22 = scalar_lea.vmem %s592_s2, %s424_s19 }
  0x1b   : > { %v225_v20 = vmul.f32 %v410_v11, %v223_v15  ;;  %v235_v22 = vmul.f32 %v411_v12, %v234_v18  ;;  %v236_v24 = vmul.f32 %v412_v13, %v234_v18  ;;  %v245_v26 = vstv %s244_s12 }
  0x1c   : > { %v226_v25 = vadd.f32 %v224_v17, %v215_v14  ;;  %s266_s17 = scvt.s32.f32 %s554_s7  ;;  %v246_v29 = vmul.f32 %v413_v19, %v245_v26  ;;  %v256_v30 = vstv %s255_s16  ;;  %v247_v32 = vmul.f32 %v414_v21, %v245_v26 }
  0x1d   : > { %v227_v27 = vadd.f32 %v225_v20, %v216_v16  ;;  %s277_s18 = scvt.s32.f32 %s559_s10  ;;  %v257_v35 = vmul.f32 %v415_v23, %v256_v30  ;;  %v258_v40 = vmul.f32 %v416_v28, %v256_v30 }
  0x1e   : > { %v237_v34 = vadd.f32 %v235_v22, %v226_v25  ;;  %v267_v36 = vstv %s266_s17 }
  0x1f   : > { %v238_v37 = vadd.f32 %v236_v24, %v227_v27  ;;  %v278_v39 = vstv %s277_s18  ;;  %v268_v43 = vmul.f32 %v417_v31, %v267_v36  ;;  %v269_v45 = vmul.f32 %v418_v33, %v267_v36 }
  0x20   : > { %v248_v42 = vadd.f32 %v246_v29, %v237_v34  ;;  %v279_v47 = vmul.f32 %v419_v38, %v278_v39  ;;  %v280_v49 = vmul.f32 %v420_v41, %v278_v39 }
  0x21   : > { %v249_v44 = vadd.f32 %v247_v32, %v238_v37 }
  0x22   : > { %v259_v46 = vadd.f32 %v257_v35, %v248_v42 }
  0x23   : > { %v260_v48 = vadd.f32 %v258_v40, %v249_v44 }
  0x24   : > { %v270_v50 = vadd.f32 %v268_v43, %v259_v46 }
  0x25   : > { %v271_v51 = vadd.f32 %v269_v45, %v260_v48 }
  0x26   : > { %v281_v52 = vadd.f32 %v279_v47, %v270_v50 }
  0x27   : > { %v282_v53 = vadd.f32 %v280_v49, %v271_v51 }
  0x28   : > { %283 = vst [vmem:[%s194_s22] sm:$0xff] %v281_v52 }
  0x29   : > { %284 = vst [vmem:[%s194_s22 + $0x8] sm:$0xff] %v282_v53 }
  0x2a PF: > { %s20_s15 = sadd.s32 1, %s486_s15   ;;  %s593_s13 = smov %s482_s14 }
  0x2b   : > { %p17_p5 = scmp.ge.s32.totalorder %s20_s15, 4   ;;  %s594_s14 = smov %s596_s0 }
  0x2d   :  { %19 = sbr.rel (!%p17_p5) target bundleno = 8 (0x8), region = 61 }

</bundles_post_ra>
